<compile_context>
chip_gen: v7x
topology: tpu7x:2x2x1
jax: 0.10.0
libtpu: 0.0.40
codegen_flags: <defaults>
</compile_context>

<pallas_src>
import jax
import jax.numpy as jnp
from jax import lax
from jax.experimental import pallas as pl
from jax.experimental.pallas import tpu as pltpu

# Keep the double-buffered weight tile under this budget (review guidance for
# v7x's 64 MiB physical VMEM; comfortably fine on v5e/v6e once the scoped
# limit is raised explicitly below).
_WEIGHT_DB_BUDGET_BYTES = 24 << 20


def _pooler_kernel(x_ref, w_ref, b_ref, o_ref):
    # x_ref : (B, H)   selected-token activations (resident across the grid)
    # w_ref : (tn, H)  weight rows in PyTorch (out, in) layout
    # b_ref : (1, tn)  bias slice
    # o_ref : (B, tn)  output tile
    #
    # x @ W_tile.T without materializing a transpose: contract lane dim of x
    # with lane dim of W (native MXU transposed-RHS form, like q @ k.T).
    y = lax.dot_general(
        x_ref[...], w_ref[...],
        dimension_numbers=(((1,), (1,)), ((), ())),
        preferred_element_type=jnp.float32)
    y = y + b_ref[...].astype(jnp.float32)
    o_ref[...] = jnp.tanh(y).astype(o_ref.dtype)


def _pick_tn(h: int, itemsize: int, budget_bytes: int = _WEIGHT_DB_BUDGET_BYTES) -> int:
    """Output-tile size for the (tn, H) weight blocks.

    Prefers (1) MXU/lane-friendly multiples of 128 that exactly tile H,
    (2) an even number of grid steps (v7x 2-TC balance on the "parallel" axis),
    (3) the fewest steps that keep the double-buffered tile under budget.
    Falls back to a single full-H block for small / odd H.
    """
    cands = [t for t in range(128, h + 1, 128) if h % t == 0]
    if not cands:
        return h  # small or non-128-multiple H: single full-weight block

    def fits(t):
        return 2 * t * h * itemsize <= budget_bytes  # double-buffered tile

    even = [t for t in cands if (h // t) % 2 == 0 and fits(t)]
    if even:
        return max(even)           # grid = 2 (or smallest even count) steps
    fitting = [t for t in cands if fits(t)]
    if fitting:
        return max(fitting)        # fewest steps within budget
    return min(cands)              # huge H: smallest MXU-friendly tile


def pooler_forward(hidden_states, weight, bias, *, index: int, weight_dtype=None):
    """hidden_states: (B, S, H); weight: (H, H) PyTorch (out, in); bias: (H,).

    Returns (B, H) = tanh(hidden_states[:, index] @ weight.T + bias).
    """
    B, S, H = hidden_states.shape
    assert weight.shape == (H, H), weight.shape
    assert bias.shape == (H,), bias.shape
    assert 0 <= index < S, (index, S)

    # Token select: trivial strided slice in the wrapper (see TODO above).
    x2d = hidden_states[:, index, :]            # (B, H)
    bias2d = bias.reshape(1, H)

    if weight_dtype is not None and jnp.dtype(weight_dtype) != weight.dtype:
        # Opt-in precision change: stream a narrower weight (accumulate f32).
        weight = weight.astype(weight_dtype)
        x2d = x2d.astype(weight_dtype)

    w_itemsize = jnp.dtype(weight.dtype).itemsize
    x_itemsize = jnp.dtype(x2d.dtype).itemsize
    o_itemsize = jnp.dtype(hidden_states.dtype).itemsize

    tn = _pick_tn(H, w_itemsize)
    grid = (H // tn,)                           # single "parallel" output axis

    # Explicit scoped-VMEM limit: block footprint + headroom, so a full-H K
    # block is not rejected by the 16 MiB (v5e) / 32 MiB (v6e, v7x) defaults.
    b_pad = max(B, 8)
    vmem_need = (2 * tn * H * w_itemsize        # weight double buffer
                 + 2 * b_pad * H * x_itemsize   # activation buffers
                 + 2 * b_pad * tn * o_itemsize  # output double buffer
                 + 2 * 8 * tn * 4)              # bias (sublane padded)
    vmem_limit = int(min(max(vmem_need + (4 << 20), 16 << 20), 64 << 20))

    cost = pl.CostEstimate(
        flops=2 * B * H * H,
        transcendentals=B * H,
        bytes_accessed=(H * H * w_itemsize          # weight stream (dominant)
                        + B * H * x_itemsize        # activations
                        + B * H * o_itemsize        # output
                        + H * jnp.dtype(bias.dtype).itemsize))

    grid_spec = pltpu.PrefetchScalarGridSpec(
        num_scalar_prefetch=0,
        grid=grid,
        in_specs=[
            pl.BlockSpec((B, H), lambda n: (0, 0)),     # activations, resident
            pl.BlockSpec((tn, H), lambda n: (n, 0)),    # weight rows (full-K)
            pl.BlockSpec((1, tn), lambda n: (0, n)),    # bias slice
        ],
        out_specs=pl.BlockSpec((B, tn), lambda n: (0, n)),
    )

    return pl.pallas_call(
        _pooler_kernel,
        out_shape=jax.ShapeDtypeStruct((B, H), hidden_states.dtype),
        grid_spec=grid_spec,
        compiler_params=pltpu.CompilerParams(
            dimension_semantics=("parallel",),
            vmem_limit_bytes=vmem_limit),
        cost_estimate=cost,
    )(x2d, weight, bias2d)


def _reference(hidden_states, weight, bias, index):
    first = hidden_states[:, index]
    return jnp.tanh(first @ weight.T + bias)


def _run_case(case_id: int, B: int, S: int, H: int, index: int):
    key = jax.random.fold_in(jax.random.PRNGKey(0), case_id)
    k_x, k_w, k_b = jax.random.split(key, 3)

    hidden_states = jax.random.normal(k_x, (B, S, H), dtype=jnp.float32)
    # Deterministic synthetic Linear params (not a checkpoint).
    bound = 1.0 / (H ** 0.5)
    weight = jax.random.uniform(k_w, (H, H), minval=-bound, maxval=bound,
                                dtype=jnp.float32)
    bias = jax.random.uniform(k_b, (H,), minval=-bound, maxval=bound,
                              dtype=jnp.float32)

    out = pooler_forward(hidden_states, weight, bias, index=index)
    out = jax.block_until_ready(out)

    ref = _reference(hidden_states, weight, bias, index)
    assert out.shape == (B, H), out.shape
    assert jnp.allclose(out, ref, atol=1e-5, rtol=1e-5), \
        f"mismatch vs reference (case {case_id})"


if __name__ == "__main__":
    # Case 0: tiny H -> single full-weight block, grid = (1,).
    _run_case(0, B=2, S=8, H=32, index=3)
    # Case 1: 128-multiple H -> tiled path (tn=128, grid=(2,), "parallel" N),
    # covering the multi-step weight stream the review asked to exercise.
    _run_case(1, B=4, S=8, H=256, index=1)
    print("KERNEL_OK")
</pallas_src>

<mosaic_0001>
module attributes {stable_mosaic.version = 11 : i64} {
  func.func @_pooler_kernel(%arg0: i32, %arg1: memref<2x32xf32, #tpu.memory_space<vmem>>, %arg2: memref<32x32xf32, #tpu.memory_space<vmem>>, %arg3: memref<1x32xf32, #tpu.memory_space<vmem>>, %arg4: memref<2x32xf32, #tpu.memory_space<vmem>>) attributes {dimension_semantics = [#tpu.dimension_semantics<parallel>], iteration_bounds = array<i64: 1>, scalar_prefetch = 0 : i64, scratch_operands = 0 : i64, tpu.core_type = #tpu.core_type<tc>, window_params = [{pipeline_mode = #tpu.pipeline_mode<synchronous>, transform_indices = @transform_0, window_bounds = array<i64: 2, 32>}, {transform_indices = @transform_1, window_bounds = array<i64: 32, 32>}, {transform_indices = @transform_2, window_bounds = array<i64: 1, 32>}, {transform_indices = @transform_3, window_bounds = array<i64: 2, 32>}]} {
    %c0 = arith.constant 0 : index
    %c0_0 = arith.constant 0 : index
    %0 = vector.load %arg1[%c0, %c0_0] : memref<2x32xf32, #tpu.memory_space<vmem>>, vector<2x32xf32>
    %c0_1 = arith.constant 0 : index
    %c0_2 = arith.constant 0 : index
    %1 = vector.load %arg2[%c0_1, %c0_2] : memref<32x32xf32, #tpu.memory_space<vmem>>, vector<32x32xf32>
    %cst = arith.constant dense<0.000000e+00> : vector<2x32xf32>
    %2 = tpu.matmul %0, %1, %cst {dimension_numbers = #tpu.dot_dimension_numbers<[1], [1], [0], [0], [0, 0, 1, 0], [], []>} : vector<2x32xf32>, vector<32x32xf32>, vector<2x32xf32> -> vector<2x32xf32>
    %c0_3 = arith.constant 0 : index
    %c0_4 = arith.constant 0 : index
    %3 = vector.load %arg3[%c0_3, %c0_4] : memref<1x32xf32, #tpu.memory_space<vmem>>, vector<1x32xf32>
    %4 = vector.broadcast %3 : vector<1x32xf32> to vector<2x32xf32>
    %5 = arith.addf %2, %4 : vector<2x32xf32>
    %6 = math.tanh %5 : vector<2x32xf32>
    %c0_5 = arith.constant 0 : index
    %c0_6 = arith.constant 0 : index
    %7 = vector.load %arg4[%c0_5, %c0_6] : memref<2x32xf32, #tpu.memory_space<vmem>>, vector<2x32xf32>
    tpu.vector_store %arg4[%c0_5, %c0_6], %6 {strides = array<i32>} : memref<2x32xf32, #tpu.memory_space<vmem>>, vector<2x32xf32>,
    return
  }
  func.func @transform_0(%arg0: i32) -> (i32, i32) {
    %c0_i32 = arith.constant 0 : i32
    %c0_i32_0 = arith.constant 0 : i32
    %c0_i32_1 = arith.constant 0 : i32
    return %c0_i32, %c0_i32_0 : i32, i32
  }
  func.func @transform_1(%arg0: i32) -> (i32, i32) {
    %c0_i32 = arith.constant 0 : i32
    %c0_i32_0 = arith.constant 0 : i32
    return %arg0, %c0_i32 : i32, i32
  }
  func.func @transform_2(%arg0: i32) -> (i32, i32) {
    %c0_i32 = arith.constant 0 : i32
    %c0_i32_0 = arith.constant 0 : i32
    return %c0_i32, %arg0 : i32, i32
  }
  func.func @transform_3(%arg0: i32) -> (i32, i32) {
    %c0_i32 = arith.constant 0 : i32
    %c0_i32_0 = arith.constant 0 : i32
    return %c0_i32, %arg0 : i32, i32
  }
}

</mosaic_0001>

<bundles_post_ra>
// kernel: tpu_custom_call.1
= control target key start
LH: loop header
LB: loop body
LE: loop exit
PB: predicated region body
PF: predicated region fallthrough
CT: control target
= control target key end

     0   :  { %8 = vsyncpa [#allocation3], 0  ;;  %s344_s0 = inlined_call_operand.hbm [shape: f32[2,32], index: 0, kind: input, shape index: {}]   ;;  %s345_s1 = inlined_call_operand.hbm [shape: f32[32,32], index: 1, kind: input, shape index: {}]   ;;  %s346_s2 = inlined_call_operand.vmem [shape: f32[1,32], index: 2, kind: input, shape index: {}]   ;;  %s347_s3 = inlined_call_operand.hbm [shape: f32[2,32], index: 3, kind: output, shape index: {}]  }
   0x1   :  { %9 = vsyncpa [#allocation6], 0 }
   0x2   :  { %10 = vsyncpa [#allocation4], 0  ;;  %s270_s12 = smov [#allocation2]   ;;  %s271_s14 = smov [#allocation5]  }
   0x3   :  { %s17_s13 = sshll.u32 %s270_s12, 4  ;;  %s26_s15 = sshll.u32 %s271_s14, 4  ;;  %s18_s13 = int_to_ptr.vmem [resolvable:$true] %s17_s13  ;;  %s298_s15 = int_to_ptr.vmem [resolvable:$true] %s26_s15 }
   0x4   :  { %s198_s18 = scalar_lea.hbm %s344_s0, 32 }
   0x5   :  { %p199_p0 = scmp.ne.s32.totalorder %s344_s0, %s198_s18  ;;  %p202_p1 = scmp.lt.u32.totalorder %s198_s18, %s344_s0 }
   0x7   :  { %p204_p2 = pnand %p202_p1, %p199_p0 }
   0x9   :  { %207 = shalt.err (!%p204_p2)
}
   0xa   :  { %s208_s23 = scalar_lea.vmem %s18_s13, 32  ;;  %p213_p4 = scmp.lt.s32.totalorder %s18_s13, %s18_s13 }
   0xb   :  { %p209_p3 = scmp.ne.s32.totalorder %s18_s13, %s208_s23  ;;  %p214_p5 = scmp.lt.s32.totalorder %s208_s23, %s208_s23 }
   0xd   :  { %p215_p6 = por %p214_p5, %p213_p4 }
   0xf   :  { %p216_p7 = pnand %p215_p6, %p209_p3 }
  0x11   :  { %219 = shalt.err (!%p216_p7)
}
  0x12   :  { %20 = dma.hbm_to_vmem [thread:$0]  %s344_s0, 32, %s18_s13, [#allocation3]  }
  0x13   :  { %s220_s28 = scalar_lea.hbm %s345_s1, 512 }
  0x14   :  { %p221_p8 = scmp.ne.s32.totalorder %s345_s1, %s220_s28  ;;  %p224_p9 = scmp.lt.u32.totalorder %s220_s28, %s345_s1 }
  0x16   :  { %p226_p10 = pnand %p224_p9, %p221_p8 }
  0x18   :  { %229 = shalt.err (!%p226_p10)
}
  0x19   :  { %s230_s6 = scalar_lea.vmem %s298_s15, 512  ;;  %p235_p12 = scmp.lt.s32.totalorder %s298_s15, %s298_s15 }
  0x1a   :  { %p231_p11 = scmp.ne.s32.totalorder %s298_s15, %s230_s6  ;;  %p236_p13 = scmp.lt.s32.totalorder %s230_s6, %s230_s6 }
  0x1c   :  { %p237_p0 = por %p236_p13, %p235_p12 }
  0x1e   :  { %p238_p1 = pnand %p237_p0, %p231_p11 }
  0x20   :  { %241 = shalt.err (!%p238_p1)
}
  0x21   :  { %s272_s0 = smov 128   ;;  %s273_s7 = smov 8  }
  0x22   :  { %32 = dma.hbm_to_vmem [thread:$0]  %s345_s1, 512, %s298_s15, [#allocation6], %s272_s0, %s272_s0, %s273_s7  }
  0x23   :  { %264 = dma.done.wait [#allocation3], 32  }
  0x24   :  { %265 = vsyncadd [#allocation3], 4294967264 }
  0x25   :  { %266 = dma.done.wait [#allocation6], 512  }
  0x26   :  { %267 = vsyncadd [#allocation6], 4294966784  ;;  %v274_v0 = vmov 0.0|0.0   ;;  %vm275_vm0 = vmmov 0   ;;  %v276_v1 = vmov 0.0   ;;  %vm53_vm1 = vcmask 261120  }
  0x27   :  { %180 = vmatprep.subr.bf16.mxu0 %v274_v0  ;;  %177 = vmatprep.mubr.msk.f32.mxu0 %vm275_vm0, %v276_v1  ;;  %v42_v2 = vld [vmem:[#allocation5] sm:$0xff]  ;;  %v43_v3 = vld [vmem:[#allocation5 + $0x8] sm:$0xff]  ;;  %vm182_vm2 = vmpackc.low %vm53_vm1, %vm53_vm1  ;;  %s277_s11 = smov [#allocation7]   ;;  %vm140_vm3 = vcmask 254976  }
  0x28   :  { %v181_v4 = vpack.c.bf16 %v43_v3, %v42_v2  ;;  %v44_v5 = vld [vmem:[#allocation5 + $0x10] sm:$0xff]  ;;  %v45_v6 = vld [vmem:[#allocation5 + $0x18] sm:$0xff]  ;;  %s148_s12 = sshll.u32 %s277_s11, 4  ;;  %s149_s12 = int_to_ptr.vmem [resolvable:$true] %s148_s12 }
  0x29   :  { %v185_v7 = vpack.c.bf16 %v45_v6, %v44_v5  ;;  %v41_v8 = vld [vmem:[#allocation2] sm:$0x3]  ;;  %s242_s13 = scalar_lea.vmem %s149_s12, 32  ;;  %p247_p3 = scmp.lt.s32.totalorder %s149_s12, %s149_s12 }
  0x2a   :  { %183 = vmatpush3.bf16.xpose.msk.msra.mxu0 %vm182_vm2, %v181_v4  ;;  %v158_v9 = vld [vmem:[%s346_s2] ss:$0 sm:$0xff]  ;;  %p243_p2 = scmp.ne.s32.totalorder %s149_s12, %s242_s13  ;;  %p248_p4 = scmp.lt.s32.totalorder %s242_s13, %s242_s13 }
  0x2b   :  { %184 = vmatprep.subr.bf16.mxu0 %v274_v0 }
  0x2c   :  { %p249_p5 = por %p248_p4, %p247_p3 }
  0x2e   :  { %p250_p6 = pnand %p249_p5, %p243_p2 }
  0x32   :  { %187 = vmatpush3.bf16.xpose.msk.msra.mxu0 %vm182_vm2, %v185_v7 }
  0x39   :  { %178 = vmatmul.mubr.msk.f32.vlgmr.msra.gmra.mrb[0].mxu0 %vm53_vm1, %v41_v8 }
 0x10c   :  { %v135_v10 = vpop.f32.mrb[0].mxu0 }
 0x10d   :  { %v136_v11 = vadd.f32 %v158_v9, %v135_v10  ;;  %v179_v12 = vpop.f32.mrb[1].mxu0 }
 0x10f   :  { %196 = vtanh.f32 %v136_v11 }
 0x119   :  { %v197_v13 = vpop.eup %196 }
 0x11a   :  { %141 = vst.msk [vmem:[#allocation7] sm:$0x3] %vm140_vm3, %v197_v13 }
 0x11b   :  { %253 = shalt.err (!%p250_p6)
}
 0x11c   :  { %s254_s2 = scalar_lea.hbm %s347_s3, 32 }
 0x11d   :  { %p255_p7 = scmp.ne.s32.totalorder %s347_s3, %s254_s2  ;;  %p258_p8 = scmp.lt.u32.totalorder %s254_s2, %s347_s3 }
 0x11f   :  { %p260_p9 = pnand %p258_p8, %p255_p7 }
 0x121   :  { %263 = shalt.err (!%p260_p9)
}
 0x122   :  { %151 = dma.vmem_to_hbm [thread:$0]  %s149_s12, 32, %s347_s3, [#allocation4]  }
 0x123   :  { %268 = dma.done.wait [#allocation4], 32  }
 0x124   :  { %269 = vsyncadd [#allocation4], 4294967264 }
 0x125   :  { %155 = vsyncpa [#allocation3], 1 }
 0x126   :  { %156 = vsyncpa [#allocation6], 1 }
 0x127   :  { %157 = vsyncpa [#allocation4], 1 }

</bundles_post_ra>
